<compile_context>
chip_gen: v6e
topology: v6e:2x2x1
jax: 0.10.0
libtpu: 0.0.40
codegen_flags: <defaults>
</compile_context>

<pallas_src>
import numpy as np
import jax
import jax.numpy as jnp
from jax.experimental import pallas as pl
from jax.experimental.pallas import tpu as pltpu


def _round_up(v, m):
    return ((v + m - 1) // m) * m


def _leaky(x, slope):
    return jnp.where(x >= 0, x, slope * x)


def _linear(h, w, b):
    """Linear layer with M-aware dispatch: small rows / small contraction use a
    VPU broadcast-FMA loop (the MXU would run nearly empty and pay push +
    result-FIFO latency), everything else goes to the MXU."""
    m, din = h.shape
    if din <= 4 or (m <= 32 and din <= 32):
        acc = h[:, 0:1] * w[0:1, :]
        for d in range(1, din):
            acc = acc + h[:, d:d + 1] * w[d:d + 1, :]
        return acc + b
    return jnp.dot(h, w, preferred_element_type=jnp.float32) + b


def _sqdist(xb):
    """Pairwise squared distances via ||x||^2 + ||x||^2.T - 2 x x^T (same
    identity as the reference).  Tiny feature dims use VPU outer products."""
    _, d = xb.shape
    if d <= 4:
        xbt = xb.T
        g = xb[:, 0:1] * xbt[0:1, :]
        for di in range(1, d):
            g = g + xb[:, di:di + 1] * xbt[di:di + 1, :]
        s_col = jnp.sum(xb * xb, axis=1, keepdims=True)
        s_row = jnp.sum(xbt * xbt, axis=0, keepdims=True)
    else:
        g = jax.lax.dot_general(xb, xb, (((1,), (1,)), ((), ())),
                                preferred_element_type=jnp.float32)
        s_col = jnp.sum(xb * xb, axis=1, keepdims=True)
        s_row = s_col.T
    return s_col + s_row - 2.0 * g


# --------------------------------------------------------------------------
# Fused GMMConv layer kernel
# --------------------------------------------------------------------------
def _make_gmm_layer_kernel(n_fc, n_fce, n_kernels, out_feats, din,
                           n_points, pack_w, want_pdist):
    K, F = n_kernels, out_feats
    KF = K * F
    KFp = KF + K
    n = n_points

    def kernel(*refs):
        gc_ref, e_ref, r_ref, b_ref, a_ref, x_ref = refs[0:6]
        base = 6
        fc_refs = refs[base:base + 2 * n_fc]
        base += 2 * n_fc
        fce_refs = refs[base:base + 2 * n_fce]
        base += 2 * n_fce
        out_ref = refs[base]
        base += 1
        if want_pdist:
            pd_ref = refs[base]
            base += 1
        hcat_sc = refs[base]
        base += 1
        if want_pdist:
            pd_sc = refs[base]

        b = pl.program_id(0)

        # ---- step 0: fc / fc_e MLP chains hoisted over ALL B*N rows ----
        @pl.when(b == 0)
        def _():
            x_all = x_ref[...]                       # (B*N, in_w)
            h = x_all[:, 0:din]
            for li in range(n_fc):
                h = _leaky(_linear(h, fc_refs[2 * li][...],
                                   fc_refs[2 * li + 1][...]), -0.8)
            he = x_all[:, din:din + 1]
            for li in range(n_fce):
                he = _leaky(_linear(he, fce_refs[2 * li][...],
                                    fce_refs[2 * li + 1][...]), -0.8)
            hcat_sc[:, 0:KF] = h                     # (B*N, K*F)
            hcat_sc[:, KF:KFp] = he                  # (B*N, K)
            if want_pdist:
                pd_sc[...] = jnp.zeros_like(pd_sc)   # zero the pad columns once

        # ---- per batch block: gaussian weighting + aggregation ----
        row0 = pl.multiple_of(b * n, n)
        hcat_b = hcat_sc[pl.ds(row0, n), :]          # (N, K*F+K)

        a = a_ref[0].astype(jnp.float32)             # (N, N) A[dst, src], 0/1
        deg = jnp.sum(a, axis=1, keepdims=True)      # (N, 1) in-degree
        degc = jnp.maximum(deg, 1.0)
        dinv = jax.lax.rsqrt(degc)                   # pseudo coordinate 1/sqrt(deg)
        dinv2 = dinv * dinv

        # separable gaussians as host-folded quadratics in dinv; one exp per
        # (N, 2K) block ([:K]=node kernels, [K:]=edge kernels), dinv^2 shared.
        gc = gc_ref[...]                             # (6, 2K)
        fac_src = jnp.exp(dinv2 * gc[0:1, :] + dinv * gc[1:2, :] + gc[2:3, :])
        fac_dst = jnp.exp(dinv2 * gc[3:4, :] + dinv * gc[4:5, :] + gc[5:6, :])

        emat = e_ref[...]                            # (2K, K*F+K) 0/1 expansion
        fsw = jnp.dot(fac_src, emat, preferred_element_type=jnp.float32)
        fdw = jnp.dot(fac_dst, emat, preferred_element_type=jnp.float32)

        msg = hcat_b * fsw                           # src-side gaussian weighting
        agg = jnp.dot(a, msg, preferred_element_type=jnp.float32)   # A @ msg
        # dst-side weighting + sum over K kernels + lane-dense padding to
        # pack_w folded into ONE matmul with the host-built reduction matrix.
        red = jnp.dot(agg * fdw, r_ref[...], preferred_element_type=jnp.float32)

        tmp = red + b_ref[...]                       # bias on node cols only
        node = _leaky(tmp, 0.2)                      # Model's F.leaky_relu(h, 0.2)
        edge = tmp * (1.0 / degc)                    # mean reducer for h_e
        col = jax.lax.broadcasted_iota(jnp.int32, (1, pack_w), 1)
        out = jnp.where(col < F, node, edge)         # [:F]=h, [F]=h_e, rest 0
        out_ref[0] = out                             # unmasked lane-dense store

        if want_pdist:
            # pairwise sq-dist of the activated node features (next layer's
            # kNN graph), fused here while h is resident in VMEM.
            sq = _sqdist(node[:, 0:F])               # (N, N)
            pd_sc[:, 0:n] = sq
            pd_ref[0] = pd_sc[...]                   # full-width store from scratch

    return kernel


def _gauss_coef(mu, inv_sigma, mu_e, inv_sigma_e):
    """Fold -0.5*(u-mu)^2*inv_sigma^2 over the (src,src)/(dst,dst) pseudo dims
    into quadratics c2*d^2 + c1*d + c0 of d = 1/sqrt(deg)."""
    def coef(mu_m, isig_m, d0, d1):
        a2 = -0.5 * isig_m ** 2
        c2 = a2[:, d0] + a2[:, d1]
        c1 = -2.0 * (a2[:, d0] * mu_m[:, d0] + a2[:, d1] * mu_m[:, d1])
        c0 = a2[:, d0] * mu_m[:, d0] ** 2 + a2[:, d1] * mu_m[:, d1] ** 2
        return jnp.stack([c2, c1, c0], axis=0)       # (3, K)
    src = jnp.concatenate([coef(mu, inv_sigma, 0, 2),
                           coef(mu_e, inv_sigma_e, 0, 2)], axis=1)
    dst = jnp.concatenate([coef(mu, inv_sigma, 1, 3),
                           coef(mu_e, inv_sigma_e, 1, 3)], axis=1)
    return jnp.concatenate([src, dst], axis=0).astype(jnp.float32)  # (6, 2K)


def _expand_matrix(K, F):
    e = np.zeros((2 * K, K * F + K), np.float32)
    for k in range(K):
        e[k, k * F:(k + 1) * F] = 1.0
        e[K + k, K * F + k] = 1.0
    return jnp.asarray(e)


def _reduce_matrix(K, F, pack_w):
    r = np.zeros((K * F + K, pack_w), np.float32)
    for k in range(K):
        for f in range(F):
            r[k * F + f, f] = 1.0
        r[K * F + k, F] = 1.0
    return jnp.asarray(r)


def gmm_conv_layer(adj, xin, p, n_points, din, want_pdist):
    """One fused GMMConv layer.
    adj: (B, N, N) bf16 adjacency A[dst, src]; xin: (B*N, in_w) slab with node
    feats in cols [0:din] and the edge feat in col [din].
    Returns packed (B, N, 128) ([:F] = leaky(0.2)-activated node feats,
    [F] = edge feat) and, when want_pdist, the (B, N, n_pad) pairwise sq-dist
    of the activated node feats (for the next layer's kNN graph)."""
    B, N = adj.shape[0], n_points
    K = p['mu'].shape[0]
    F = p['bias'].shape[0]
    KFp = K * F + K
    pack_w = _round_up(max(F + 1, 128), 128)
    n_pad = _round_up(N, 128)
    n_fc, n_fce = len(p['fc']), len(p['fc_e'])

    gcoef = _gauss_coef(p['mu'], p['inv_sigma'], p['mu_e'], p['inv_sigma_e'])
    emat = _expand_matrix(K, F)
    rmat = _reduce_matrix(K, F, pack_w)
    bias_pad = jnp.zeros((1, pack_w), jnp.float32).at[0, :F].set(p['bias'])

    def full2(shape):
        return pl.BlockSpec(shape, lambda i: (0, 0))

    in_specs = [full2(gcoef.shape), full2(emat.shape), full2(rmat.shape),
                full2(bias_pad.shape),
                pl.BlockSpec((1, N, N), lambda i: (i, 0, 0)),
                full2(xin.shape)]
    args = [gcoef, emat, rmat, bias_pad, adj, xin]
    for w, bb in list(p['fc']) + list(p['fc_e']):
        in_specs += [full2(w.shape), full2(bb.shape)]
        args += [w, bb]

    out_shape = [jax.ShapeDtypeStruct((B, N, pack_w), jnp.float32)]
    out_specs = [pl.BlockSpec((1, N, pack_w), lambda i: (i, 0, 0))]
    scratch = [pltpu.VMEM((B * N, KFp), jnp.float32)]
    if want_pdist:
        out_shape.append(jax.ShapeDtypeStruct((B, N, n_pad), jnp.float32))
        out_specs.append(pl.BlockSpec((1, N, n_pad), lambda i: (i, 0, 0)))
        scratch.append(pltpu.VMEM((N, n_pad), jnp.float32))

    outs = pl.pallas_call(
        _make_gmm_layer_kernel(n_fc, n_fce, K, F, din, N, pack_w, want_pdist),
        out_shape=tuple(out_shape),
        grid=(B,),
        in_specs=in_specs,
        out_specs=tuple(out_specs),
        scratch_shapes=scratch,
        # "arbitrary" (sequential) is required: the step-0 hoisted MLP lives in
        # a VMEM scratch consumed by later grid steps.  At these sizes the
        # megacore split would be noise anyway (B=2 -> one step per core).
        # NOTE(scaling): at large N the (1,N,N) adjacency block is O(N^2);
        # tile the dst axis, set vmem_limit_bytes (64 MiB VMEM on v7x, 16 MiB
        # scoped default on v5e) or move to an index-gather aggregation.
        compiler_params=pltpu.CompilerParams(
            dimension_semantics=("arbitrary",)),
    )(*args)
    if want_pdist:
        return outs[0], outs[1]
    return outs[0]


# --------------------------------------------------------------------------
# Pairwise squared distance kernel (layer-0 graph only; later layers get their
# distances fused into the GMMConv kernel)
# --------------------------------------------------------------------------
def _make_pdist_kernel(bsz, n, n_pad):
    def kernel(x_ref, o_ref):
        pad = jnp.zeros((n, n_pad - n), jnp.float32) if n_pad > n else None
        for bi in range(bsz):                         # bsz static & small
            sq = _sqdist(x_ref[bi])                   # (N, N)
            o_ref[bi] = sq if pad is None else jnp.concatenate([sq, pad], -1)
    return kernel


def pairwise_sq_dist(x):
    b, n, d = x.shape
    n_pad = _round_up(n, 128)
    out = pl.pallas_call(
        _make_pdist_kernel(b, n, n_pad),
        out_shape=jax.ShapeDtypeStruct((b, n, n_pad), jnp.float32),
        grid=(1,),
        in_specs=[pl.BlockSpec((b, n, d), lambda i: (0, 0, 0))],
        out_specs=pl.BlockSpec((b, n, n_pad), lambda i: (0, 0, 0)),
        compiler_params=pltpu.CompilerParams(dimension_semantics=("arbitrary",)),
    )(x)
    return out[:, :, :n]


def adjacency_from_dist(dist, k, remove_self_loops):
    """dist: (B, N, N) -> bf16 adjacency A[b, dst, src] = 1 iff src is one of
    dst's k nearest neighbours (DGL KNNGraph convention: predecessors = kNN)."""
    _, n, _ = dist.shape
    # TODO(synk): top-k neighbour selection / one-hot adjacency build have no
    # clean Pallas equivalent; XLA top_k + one_hot.
    _, idx = jax.lax.top_k(-dist, k)                  # (B, N, k)
    adj = jnp.minimum(
        jnp.sum(jax.nn.one_hot(idx, n, dtype=jnp.float32), axis=2), 1.0)
    if remove_self_loops:
        adj = adj * (1.0 - jnp.eye(n, dtype=jnp.float32))
    # 0/1 entries are exact in bf16: halves adjacency HBM/VMEM traffic.
    return adj.astype(jnp.bfloat16)


def knn_adjacency(x, k, remove_self_loops):
    return adjacency_from_dist(pairwise_sq_dist(x), k, remove_self_loops)


# --------------------------------------------------------------------------
# Fused MLP kernel for the final projection head
# --------------------------------------------------------------------------
def _make_mlp_kernel(num_layers, neg_slope, act_last):
    def kernel(*refs):
        x_ref, o_ref = refs[0], refs[-1]
        h = x_ref[...]
        for li in range(num_layers):
            h = _linear(h, refs[1 + 2 * li][...], refs[2 + 2 * li][...])
            if li < num_layers - 1 or act_last:
                h = _leaky(h, neg_slope)
        o_ref[...] = h                                # lane-dense store
    return kernel


def mlp_forward(x, params, neg_slope, act_last):
    """Single grid step over all rows; the LAST weight/bias are zero-padded on
    the host to a 128-wide lane-dense output (sliced back afterwards)."""
    n, din = x.shape
    dout = params[-1][0].shape[1]
    outw = _round_up(max(dout, 128), 128)
    layers = list(params)
    if outw > dout:
        w_l, b_l = layers[-1]
        layers[-1] = (jnp.pad(w_l, ((0, 0), (0, outw - dout))),
                      jnp.pad(b_l, ((0, 0), (0, outw - dout))))
    in_specs = [pl.BlockSpec((n, din), lambda i: (0, 0))]
    args = [x]
    for w, b in layers:
        in_specs += [pl.BlockSpec(w.shape, lambda i: (0, 0)),
                     pl.BlockSpec(b.shape, lambda i: (0, 0))]
        args += [w, b]
    out = pl.pallas_call(
        _make_mlp_kernel(len(layers), neg_slope, act_last),
        out_shape=jax.ShapeDtypeStruct((n, outw), jnp.float32),
        grid=(1,),
        in_specs=in_specs,
        out_specs=pl.BlockSpec((n, outw), lambda i: (0, 0)),
        compiler_params=pltpu.CompilerParams(dimension_semantics=("arbitrary",)),
    )(*args)
    return out[:, :dout]


# --------------------------------------------------------------------------
# Model forward (glue orchestrating the Pallas kernels)
# --------------------------------------------------------------------------
def model_forward(params, gr_adj, x_idx, x, x_en, length, k):
    batch_size, n_points, in_dims = x.shape
    nt = batch_size * n_points
    n_layers = len(params['conv'])

    # lane layout of the slab passed between layers: [0:din]=node, [din]=edge
    xin = jnp.concatenate([x.reshape(nt, in_dims), x_en.reshape(nt, 1)], axis=1)
    din = in_dims
    adj = gr_adj
    hs = []
    for i in range(n_layers):
        p = params['conv'][i]
        f_out = p['bias'].shape[0]
        want_pd = i < n_layers - 1
        if want_pd:
            packed, pd = gmm_conv_layer(adj, xin, p, n_points, din, True)
            # next layer's graph: kNN of the activated node feats, no self loops
            adj = adjacency_from_dist(pd[:, :, :n_points], k,
                                      remove_self_loops=True)
        else:
            packed = gmm_conv_layer(adj, xin, p, n_points, din, False)
        hs.append(packed[:, :, f_out:f_out + 1])      # h_en per layer (B, N, 1)
        xin = packed.reshape(nt, packed.shape[-1])    # next layer input slab
        din = f_out

    hcat = jnp.concatenate(hs, axis=2).reshape(nt, n_layers)
    out = mlp_forward(hcat, params['proj'], neg_slope=-0.8, act_last=False)

    # TODO(synk): data-dependent scatter onto the image grid has no clean Pallas
    # equivalent; done with JAX .at[].set (matches img[idx0, idx1, idx2] = e_seq).
    images = []
    offset = 0
    for li in length:                                 # static python ints
        e_seq = out[offset:offset + li, 0]
        idx_seq = x_idx[offset:offset + li]
        img = jnp.zeros((7, 64, 64), jnp.float32)
        img = img.at[idx_seq[:, 0], idx_seq[:, 1], idx_seq[:, 2]].set(e_seq)
        images.append(img[None])
        offset += li
    out_image = jnp.concatenate(images, axis=0)       # (num_seq, 7, 64, 64)
    return out_image[:, 1:, :, :]                     # (num_seq, 6, 64, 64)


# --------------------------------------------------------------------------
# Deterministic parameter initialization (mirrors the module's __init__ shapes)
# --------------------------------------------------------------------------
def _linear_params(key, din, dout):
    kw, kb = jax.random.split(key)
    s = 1.0 / jnp.sqrt(jnp.float32(din))
    w = jax.random.uniform(kw, (din, dout), jnp.float32, -s, s)
    b = jax.random.uniform(kb, (1, dout), jnp.float32, -s, s)
    return w, b


def _init_gmm_conv(key, in_feats, out_feats, dim, n_kernels):
    keys = jax.random.split(key, 10)
    fc_dims = [(in_feats, 20), (20, 40), (40, 60), (60, n_kernels * out_feats)]
    fce_dims = [(1, 20), (20, 40), (40, 60), (60, n_kernels)]
    return dict(
        fc=[_linear_params(keys[i], a, b) for i, (a, b) in enumerate(fc_dims)],
        fc_e=[_linear_params(keys[4 + i], a, b) for i, (a, b) in enumerate(fce_dims)],
        mu=0.1 * jax.random.normal(keys[8], (n_kernels, dim), jnp.float32),
        inv_sigma=jnp.ones((n_kernels, dim), jnp.float32),
        mu_e=0.1 * jax.random.normal(keys[9], (n_kernels, dim), jnp.float32),
        inv_sigma_e=jnp.ones((n_kernels, dim), jnp.float32),
        bias=jnp.zeros((out_feats,), jnp.float32),
    )


def init_model(key, k, feature_dims, kernel_dims, output_classes, input_dims=3):
    n_layers = len(feature_dims)
    keys = jax.random.split(key, n_layers + 6)
    conv = [_init_gmm_conv(keys[i],
                           feature_dims[i - 1] if i > 0 else input_dims,
                           feature_dims[i], 4, kernel_dims[i])
            for i in range(n_layers)]
    proj_dims = [(n_layers, 20), (20, 40), (40, 30), (30, 10), (10, 5),
                 (5, output_classes)]
    proj = [_linear_params(keys[n_layers + i], a, b)
            for i, (a, b) in enumerate(proj_dims)]
    return dict(conv=conv, proj=proj)


# --------------------------------------------------------------------------
if __name__ == "__main__":
    key = jax.random.PRNGKey(0)
    k = 4
    feature_dims = [8, 8]
    kernel_dims = [4, 4]
    output_classes = 1          # required by the final per-point scalar scatter
    input_dims = 3
    batch_size, n_points = 2, 16

    kp, kx, ke, ki = jax.random.split(key, 4)
    params = init_model(kp, k, feature_dims, kernel_dims, output_classes, input_dims)

    x = jax.random.normal(kx, (batch_size, n_points, input_dims), jnp.float32)
    x_en = jax.random.normal(ke, (batch_size, n_points, 1), jnp.float32)
    x_idx = jnp.stack([
        jax.random.randint(ki, (batch_size * n_points,), 0, 7),
        jax.random.randint(jax.random.fold_in(ki, 1), (batch_size * n_points,), 0, 64),
        jax.random.randint(jax.random.fold_in(ki, 2), (batch_size * n_points,), 0, 64),
    ], axis=1)
    length = [n_points, n_points]                 # one sequence per point set

    # first-layer graph `gr`: kNN graph of the input coordinates (self-loops kept)
    gr_adj = knn_adjacency(x, k, remove_self_loops=False)

    out = model_forward(params, gr_adj, x_idx, x, x_en, length, k)
    jax.block_until_ready(out)
    assert out.shape == (len(length), 6, 64, 64) and out.dtype == jnp.float32
    print("KERNEL_OK")
</pallas_src>

<mosaic_0001>
module attributes {stable_mosaic.version = 11 : i64} {
  func.func @kernel(%arg0: i32, %arg1: memref<2x16x3xf32, #tpu.memory_space<vmem>>, %arg2: memref<2x16x128xf32, #tpu.memory_space<vmem>>) attributes {dimension_semantics = [#tpu.dimension_semantics<arbitrary>], iteration_bounds = array<i64: 1>, scalar_prefetch = 0 : i64, scratch_operands = 0 : i64, tpu.core_type = #tpu.core_type<tc>, window_params = [{pipeline_mode = #tpu.pipeline_mode<synchronous>, transform_indices = @transform_0, window_bounds = array<i64: 2, 16, 3>}, {pipeline_mode = #tpu.pipeline_mode<synchronous>, transform_indices = @transform_1, window_bounds = array<i64: 2, 16, 128>}]} {
    %cst = arith.constant 0.000000e+00 : f32
    %0 = vector.broadcast %cst : f32 to vector<16x112xf32>
    %c0 = arith.constant 0 : index
    %c0_0 = arith.constant 0 : index
    %c0_1 = arith.constant 0 : index
    %1 = vector.load %arg1[%c0, %c0_0, %c0_1] : memref<2x16x3xf32, #tpu.memory_space<vmem>>, vector<1x16x3xf32>
    %2 = vector.shape_cast %1 : vector<1x16x3xf32> to vector<16x3xf32>
    %3 = tpu.transpose %2, [1, 0] : vector<16x3xf32> -> vector<3x16xf32>
    %4 = vector.extract_strided_slice %2 {offsets = [0, 0], sizes = [16, 1], strides = [1, 1]} : vector<16x3xf32> to vector<16x1xf32>
    %5 = vector.extract_strided_slice %3 {offsets = [0, 0], sizes = [1, 16], strides = [1, 1]} : vector<3x16xf32> to vector<1x16xf32>
    %6 = vector.broadcast %4 : vector<16x1xf32> to vector<16x16xf32>
    %7 = vector.broadcast %5 : vector<1x16xf32> to vector<16x16xf32>
    %8 = arith.mulf %6, %7 : vector<16x16xf32>
    %9 = vector.extract_strided_slice %2 {offsets = [0, 1], sizes = [16, 1], strides = [1, 1]} : vector<16x3xf32> to vector<16x1xf32>
    %10 = vector.extract_strided_slice %3 {offsets = [1, 0], sizes = [1, 16], strides = [1, 1]} : vector<3x16xf32> to vector<1x16xf32>
    %11 = vector.broadcast %9 : vector<16x1xf32> to vector<16x16xf32>
    %12 = vector.broadcast %10 : vector<1x16xf32> to vector<16x16xf32>
    %13 = arith.mulf %11, %12 : vector<16x16xf32>
    %14 = arith.addf %8, %13 : vector<16x16xf32>
    %15 = vector.extract_strided_slice %2 {offsets = [0, 2], sizes = [16, 1], strides = [1, 1]} : vector<16x3xf32> to vector<16x1xf32>
    %16 = vector.extract_strided_slice %3 {offsets = [2, 0], sizes = [1, 16], strides = [1, 1]} : vector<3x16xf32> to vector<1x16xf32>
    %17 = vector.broadcast %15 : vector<16x1xf32> to vector<16x16xf32>
    %18 = vector.broadcast %16 : vector<1x16xf32> to vector<16x16xf32>
    %19 = arith.mulf %17, %18 : vector<16x16xf32>
    %20 = arith.addf %14, %19 : vector<16x16xf32>
    %21 = arith.mulf %2, %2 : vector<16x3xf32>
    %cst_2 = arith.constant dense<0.000000e+00> : vector<16xf32>
    %22 = vector.multi_reduction <add>, %21, %cst_2 [1] : vector<16x3xf32> to vector<16xf32>
    %23 = vector.shape_cast %22 : vector<16xf32> to vector<16x1xf32>
    %24 = arith.mulf %3, %3 : vector<3x16xf32>
    %cst_3 = arith.constant dense<0.000000e+00> : vector<16xf32>
    %25 = vector.multi_reduction <add>, %24, %cst_3 [0] : vector<3x16xf32> to vector<16xf32>
    %26 = vector.shape_cast %25 : vector<16xf32> to vector<1x16xf32>
    %27 = vector.broadcast %23 : vector<16x1xf32> to vector<16x16xf32>
    %28 = vector.broadcast %26 : vector<1x16xf32> to vector<16x16xf32>
    %29 = arith.addf %27, %28 : vector<16x16xf32>
    %cst_4 = arith.constant 2.000000e+00 : f32
    %30 = vector.broadcast %cst_4 : f32 to vector<16x16xf32>
    %31 = arith.mulf %30, %20 : vector<16x16xf32>
    %32 = arith.subf %29, %31 : vector<16x16xf32>
    %33 = tpu.concatenate %32, %0 in 1 : vector<16x16xf32>, vector<16x112xf32> -> vector<16x128xf32>
    %c0_5 = arith.constant 0 : index
    %c0_6 = arith.constant 0 : index
    %c0_7 = arith.constant 0 : index
    %34 = vector.load %arg2[%c0_5, %c0_6, %c0_7] : memref<2x16x128xf32, #tpu.memory_space<vmem>>, vector<1x16x128xf32>
    %35 = vector.shape_cast %34 : vector<1x16x128xf32> to vector<16x128xf32>
    %36 = vector.shape_cast %33 : vector<16x128xf32> to vector<1x16x128xf32>
    tpu.vector_store %arg2[%c0_5, %c0_6, %c0_7], %36 {strides = array<i32>} : memref<2x16x128xf32, #tpu.memory_space<vmem>>, vector<1x16x128xf32>,
    %c1 = arith.constant 1 : index
    %c0_8 = arith.constant 0 : index
    %c0_9 = arith.constant 0 : index
    %37 = vector.load %arg1[%c1, %c0_8, %c0_9] : memref<2x16x3xf32, #tpu.memory_space<vmem>>, vector<1x16x3xf32>
    %38 = vector.shape_cast %37 : vector<1x16x3xf32> to vector<16x3xf32>
    %39 = tpu.transpose %38, [1, 0] : vector<16x3xf32> -> vector<3x16xf32>
    %40 = vector.extract_strided_slice %38 {offsets = [0, 0], sizes = [16, 1], strides = [1, 1]} : vector<16x3xf32> to vector<16x1xf32>
    %41 = vector.extract_strided_slice %39 {offsets = [0, 0], sizes = [1, 16], strides = [1, 1]} : vector<3x16xf32> to vector<1x16xf32>
    %42 = vector.broadcast %40 : vector<16x1xf32> to vector<16x16xf32>
    %43 = vector.broadcast %41 : vector<1x16xf32> to vector<16x16xf32>
    %44 = arith.mulf %42, %43 : vector<16x16xf32>
    %45 = vector.extract_strided_slice %38 {offsets = [0, 1], sizes = [16, 1], strides = [1, 1]} : vector<16x3xf32> to vector<16x1xf32>
    %46 = vector.extract_strided_slice %39 {offsets = [1, 0], sizes = [1, 16], strides = [1, 1]} : vector<3x16xf32> to vector<1x16xf32>
    %47 = vector.broadcast %45 : vector<16x1xf32> to vector<16x16xf32>
    %48 = vector.broadcast %46 : vector<1x16xf32> to vector<16x16xf32>
    %49 = arith.mulf %47, %48 : vector<16x16xf32>
    %50 = arith.addf %44, %49 : vector<16x16xf32>
    %51 = vector.extract_strided_slice %38 {offsets = [0, 2], sizes = [16, 1], strides = [1, 1]} : vector<16x3xf32> to vector<16x1xf32>
    %52 = vector.extract_strided_slice %39 {offsets = [2, 0], sizes = [1, 16], strides = [1, 1]} : vector<3x16xf32> to vector<1x16xf32>
    %53 = vector.broadcast %51 : vector<16x1xf32> to vector<16x16xf32>
    %54 = vector.broadcast %52 : vector<1x16xf32> to vector<16x16xf32>
    %55 = arith.mulf %53, %54 : vector<16x16xf32>
    %56 = arith.addf %50, %55 : vector<16x16xf32>
    %57 = arith.mulf %38, %38 : vector<16x3xf32>
    %cst_10 = arith.constant dense<0.000000e+00> : vector<16xf32>
    %58 = vector.multi_reduction <add>, %57, %cst_10 [1] : vector<16x3xf32> to vector<16xf32>
    %59 = vector.shape_cast %58 : vector<16xf32> to vector<16x1xf32>
    %60 = arith.mulf %39, %39 : vector<3x16xf32>
    %cst_11 = arith.constant dense<0.000000e+00> : vector<16xf32>
    %61 = vector.multi_reduction <add>, %60, %cst_11 [0] : vector<3x16xf32> to vector<16xf32>
    %62 = vector.shape_cast %61 : vector<16xf32> to vector<1x16xf32>
    %63 = vector.broadcast %59 : vector<16x1xf32> to vector<16x16xf32>
    %64 = vector.broadcast %62 : vector<1x16xf32> to vector<16x16xf32>
    %65 = arith.addf %63, %64 : vector<16x16xf32>
    %cst_12 = arith.constant 2.000000e+00 : f32
    %66 = vector.broadcast %cst_12 : f32 to vector<16x16xf32>
    %67 = arith.mulf %66, %56 : vector<16x16xf32>
    %68 = arith.subf %65, %67 : vector<16x16xf32>
    %69 = tpu.concatenate %68, %0 in 1 : vector<16x16xf32>, vector<16x112xf32> -> vector<16x128xf32>
    %c1_13 = arith.constant 1 : index
    %c0_14 = arith.constant 0 : index
    %c0_15 = arith.constant 0 : index
    %70 = vector.load %arg2[%c1_13, %c0_14, %c0_15] : memref<2x16x128xf32, #tpu.memory_space<vmem>>, vector<1x16x128xf32>
    %71 = vector.shape_cast %70 : vector<1x16x128xf32> to vector<16x128xf32>
    %72 = vector.shape_cast %69 : vector<16x128xf32> to vector<1x16x128xf32>
    tpu.vector_store %arg2[%c1_13, %c0_14, %c0_15], %72 {strides = array<i32>} : memref<2x16x128xf32, #tpu.memory_space<vmem>>, vector<1x16x128xf32>,
    return
  }
  func.func @transform_0(%arg0: i32) -> (i32, i32, i32) {
    %c0_i32 = arith.constant 0 : i32
    %c0_i32_0 = arith.constant 0 : i32
    %c0_i32_1 = arith.constant 0 : i32
    %c0_i32_2 = arith.constant 0 : i32
    return %c0_i32, %c0_i32_0, %c0_i32_1 : i32, i32, i32
  }
  func.func @transform_1(%arg0: i32) -> (i32, i32, i32) {
    %c0_i32 = arith.constant 0 : i32
    %c0_i32_0 = arith.constant 0 : i32
    %c0_i32_1 = arith.constant 0 : i32
    %c0_i32_2 = arith.constant 0 : i32
    return %c0_i32, %c0_i32_0, %c0_i32_1 : i32, i32, i32
  }
}

</mosaic_0001>

<bundles_post_ra>
// kernel: tpu_custom_call.1
= control target key start
LH: loop header
LB: loop body
LE: loop exit
PB: predicated region body
PF: predicated region fallthrough
CT: control target
= control target key end

     0   :  { %s325_s0 = inlined_call_operand.vmem [shape: f32[2,16,3], index: 0, kind: input, shape index: {}]   ;;  %s326_s1 = inlined_call_operand.hbm [shape: f32[2,16,128], index: 1, kind: output, shape index: {}]  }
   0x1   :  { %v246_v0 = vld [vmem:[%s325_s0 + $0x10] sm:$0xff]  ;;  %v9_v1 = vld [vmem:[%s325_s0] sm:$0xff] }
   0x2   :  { %123 = vxpose.xlu1.b32.start [1/2] (short) (narrow) %v246_v0, 8  ;;  %11 = vxpose.xlu0.b32.start [1/2] (short) (narrow) %v9_v1, 8 }
   0x3   :  { %6 = vsyncpa [#allocation3], 0  ;;  %v247_v2 = vld [vmem:[%s325_s0 + $0x18] sm:$0xff]  ;;  %v10_v3 = vld [vmem:[%s325_s0 + $0x8] sm:$0xff]  ;;  %v284_v4 = vmov 1   ;;  %v285_v5 = vmov 2   ;;  %v203_v9 = vmul.f32 %v246_v0, %v246_v0  ;;  %v91_v13 = vmul.f32 %v9_v1, %v9_v1 }
   0x4   :  { %v92_v6 = vmul.f32 %v10_v3, %v10_v3  ;;  %vm93_vm0 = vcmask 23552   ;;  %v286_v7 = vmov 0   ;;  %v204_v11 = vmul.f32 %v247_v2, %v247_v2  ;;  %s287_s0 = smov [#allocation2]  }
   0x5   :  { %v205_v10 = vsel %vm93_vm0, %v203_v9, 0.0  ;;  %v94_v14 = vsel %vm93_vm0, %v91_v13, 0.0  ;;  %vm101_vm1 = vcmask 124928   ;;  %v53_v27 = vlaneseq  ;;  %s235_s14 = sshll.u32 %s287_s0, 4  ;;  %s236_s14 = int_to_ptr.vmem [resolvable:$true] %s235_s14 }
   0x6   :  { %124 = vxpose.xlu1.b32.end [2/2] (short) (narrow) %v247_v2, 8  ;;  %12 = vxpose.xlu0.b32.end [2/2] (short) (narrow) %v10_v3, 8  ;;  %v97_v8 = vsel %vm93_vm0, %v92_v6, 0.0  ;;  %v208_v12 = vsel %vm93_vm0, %v204_v11, 0.0  ;;  %vm115_vm2 = vcmask 130048   ;;  %s262_s15 = scalar_lea.vmem %s236_s14, 512  ;;  %p267_p1 = scmp.lt.s32.totalorder %s236_s14, %s236_s14 }
   0x7   :  { %v54_v31 = vshrl.u32 %v53_v27, 7  ;;  %p263_p0 = scmp.ne.s32.totalorder %s236_s14, %s262_s15  ;;  %p268_p2 = scmp.lt.s32.totalorder %s262_s15, %s262_s15 }
   0x9   :  { %v69_v35 = vsub.s32 1, %v54_v31  ;;  %v85_v36 = vsub.s32 2, %v54_v31  ;;  %v55_v37 = vsub.s32 0, %v54_v31  ;;  %p269_p3 = por %p268_p2, %p267_p1 }
   0xb   :  { %p270_p4 = pnand %p269_p3, %p263_p0 }
  0x24   :  { %255 = vset.pattern.permute.xlu1 %v284_v4 }
  0x25   :  { %64 = vperm.xlu1 %255, %v10_v3  }
  0x29   :  { %256 = vset.pattern.permute.xlu1 %v285_v5 }
  0x2a   :  { %76 = vperm.xlu1 %256, %v9_v1  }
  0x2e   :  { %80 = vperm.xlu1 %256, %v10_v3  }
  0x2f   :  { %258 = vset.pattern.permute.xlu0 %v286_v7 }
  0x32   :  { %257 = vset.pattern.permute.xlu1 %v286_v7 }
  0x33   :  { %98 = vadd.xlane.f32.xlu0 %v97_v8 }
  0x37   :  { %206 = vadd.xlane.f32.xlu0 %v205_v10 }
  0x3b   :  { %209 = vadd.xlane.f32.xlu0 %v208_v12 }
  0x51   :  { %157 = vperm.xlu0 %258, %v246_v0  }
  0x52   :  { %95 = vadd.xlane.f32.xlu1 %v94_v14 }
  0x55   :  { %259 = vset.pattern.permute.xlu0 %v284_v4 }
  0x56   :  { %60 = vperm.xlu0 %259, %v9_v1  }
  0x5a   :  { %172 = vperm.xlu0 %259, %v246_v0  }
  0x5e   :  { %176 = vperm.xlu0 %259, %v247_v2  }
  0x62   :  { %261 = vset.pattern.permute.xlu0 %v285_v5 }
  0x63   :  { %192 = vperm.xlu0 %261, %v247_v2   ;;  %45 = vperm.xlu1 %257, %v9_v1  }
  0x67   :  { %50 = vperm.xlu1 %257, %v10_v3  }
  0x6b   :  { %162 = vperm.xlu1 %257, %v247_v2  }
  0x6f   :  { %260 = vset.pattern.permute.xlu1 %v285_v5 }
  0x70   :  { %188 = vperm.xlu1 %260, %v246_v0  }
  0x7e   :  { %v27_v15 = vpop.trf.xlu0  ;;  %v139_v18 = vpop.trf.xlu1 }
  0x7f   :  { %v100_v19 = vmul.f32 %v27_v15, %v27_v15  ;;  %v211_v24 = vmul.f32 %v139_v18, %v139_v18  ;;  %v70_v42 = vrot.slane %v27_v15, %v69_v35  ;;  %v86_v43 = vrot.slane %v27_v15, %v85_v36 }
  0x80   :  { %v56_v44 = vrot.slane %v27_v15, %v55_v37  ;;  %v168_v59 = vrot.slane %v139_v18, %v55_v37  ;;  %v182_v60 = vrot.slane %v139_v18, %v69_v35  ;;  %v198_v3 = vrot.slane %v139_v18, %v85_v36 }
  0x81   :  { %v102_v22 = vsel %vm101_vm1, %v100_v19, 0.0  ;;  %v212_v29 = vsel %vm101_vm1, %v211_v24, 0.0 }
  0x82   :  { %v103_v25 = vrot.slane %v102_v22, 4  ;;  %v213_v33 = vrot.slane %v212_v29, 4 }
  0x84   :  { %v104_v28 = vadd.f32 %v103_v25, %v102_v22  ;;  %v214_v38 = vadd.f32 %v213_v33, %v212_v29 }
  0x86   :  { %v105_v34 = vrot.slane %v104_v28, 2  ;;  %v215_v45 = vrot.slane %v214_v38, 2 }
  0x88   :  { %v106_v41 = vadd.f32 %v105_v34, %v104_v28  ;;  %v216_v53 = vadd.f32 %v215_v45, %v214_v38 }
  0x8a   :  { %v107_v47 = vrot.slane %v106_v41, 1  ;;  %v217_v1 = vrot.slane %v216_v53, 1 }
  0x8c   :  { %v108_v56 = vadd.f32 %v107_v47, %v106_v41  ;;  %v218_v19 = vadd.f32 %v217_v1, %v216_v53 }
  0xa0   :  { %v65_v21 = vpop.permute.xlu1 %64 }
  0xa1   :  { %v72_v55 = vmul.f32 %v70_v42, %v65_v21 }
  0xa5   :  { %v77_v26 = vpop.permute.xlu1 %76 }
  0xa6   :  { %v87_v51 = vmul.f32 %v86_v43, %v77_v26 }
  0xa9   :  { %v81_v32 = vpop.permute.xlu1 %80 }
  0xaa   :  { %v88_v61 = vmul.f32 %v86_v43, %v81_v32 }
  0xbc   :  { %v99_v16 = vpop.xlane.xlu0 %98 }
  0xbd   :  { %v110_v10 = vadd.f32 %v108_v56, %v99_v16 }
  0xc0   :  { %v312_v17 = vpop.xlane.xlu0 %206 }
  0xc1   :  { %v219_v16 = vadd.f32 %v218_v19, %v312_v17 }
  0xc4   :  { %v314_v20 = vpop.xlane.xlu0 %209 }
  0xc5   :  { %v220_v26 = vadd.f32 %v218_v19, %v314_v20 }
  0xcc   :  { %v158_v23 = vpop.permute.xlu0 %157 }
  0xcd   :  { %v169_v11 = vmul.f32 %v168_v59, %v158_v23 }
  0xd1   :  { %v61_v30 = vpop.permute.xlu0 %60 }
  0xd2   :  { %v71_v48 = vmul.f32 %v70_v42, %v61_v30 }
  0xd5   :  { %v173_v39 = vpop.permute.xlu0 %172 }
  0xd6   :  { %v183_v2 = vmul.f32 %v182_v60, %v173_v39 }
  0xd8   :  { %v185_v22 = vadd.f32 %v183_v2, %v169_v11 }
  0xd9   :  { %v177_v50 = vpop.permute.xlu0 %176 }
  0xda   :  { %v184_v6 = vmul.f32 %v182_v60, %v177_v50 }
  0xdb   :  { %v96_v40 = vpop.xlane.xlu1 %95 }
  0xdc   :  { %v109_v62 = vadd.f32 %v108_v56, %v96_v40 }
  0xde   :  { %v193_v4 = vpop.permute.xlu0 %192 }
  0xdf   :  { %v46_v46 = vpop.permute.xlu1 %45  ;;  %v200_v12 = vmul.f32 %v198_v3, %v193_v4 }
  0xe0   :  { %v57_v49 = vmul.f32 %v56_v44, %v46_v46 }
  0xe2   :  { %v73_v52 = vadd.f32 %v71_v48, %v57_v49 }
  0xe3   :  { %v51_v54 = vpop.permute.xlu1 %50 }
  0xe4   :  { %v89_v57 = vadd.f32 %v87_v51, %v73_v52  ;;  %v58_v58 = vmul.f32 %v56_v44, %v51_v54 }
  0xe6   :  { %v111_v63 = vmul.f32 2.0, %v89_v57  ;;  %v74_v0 = vadd.f32 %v72_v55, %v58_v58 }
  0xe7   :  { %v163_v5 = vpop.permute.xlu1 %162 }
  0xe8   :  { %v113_v7 = vsub.f32 %v109_v62, %v111_v63  ;;  %v90_v8 = vadd.f32 %v88_v61, %v74_v0  ;;  %v170_v9 = vmul.f32 %v168_v59, %v163_v5 }
  0xea   :  { %v116_v13 = vsel %vm115_vm2, %v113_v7, 0.0  ;;  %v112_v14 = vmul.f32 2.0, %v90_v8  ;;  %v186_v15 = vadd.f32 %v184_v6, %v170_v9 }
  0xeb   :  { %118 = vst [vmem:[#allocation2] sm:$0xff] %v116_v13  ;;  %v189_v21 = vpop.permute.xlu1 %188 }
  0xec   :  { %v114_v24 = vsub.f32 %v110_v10, %v112_v14  ;;  %v202_v18 = vadd.f32 %v200_v12, %v186_v15  ;;  %v199_v25 = vmul.f32 %v198_v3, %v189_v21 }
  0xee   :  { %v117_v27 = vsel %vm115_vm2, %v114_v24, 0.0  ;;  %v222_v28 = vmul.f32 2.0, %v202_v18  ;;  %v201_v29 = vadd.f32 %v199_v25, %v185_v22 }
  0xef   :  { %119 = vst [vmem:[#allocation2 + $0x8] sm:$0xff] %v117_v27 }
  0xf0   :  { %v224_v23 = vsub.f32 %v220_v26, %v222_v28  ;;  %v221_v30 = vmul.f32 2.0, %v201_v29 }
  0xf2   :  { %v226_v31 = vsel %vm115_vm2, %v224_v23, 0.0  ;;  %v223_v32 = vsub.f32 %v219_v16, %v221_v30 }
  0xf3   :  { %229 = vst [vmem:[#allocation2 + $0x18] sm:$0xff] %v226_v31 }
  0xf4   :  { %v225_v33 = vsel %vm115_vm2, %v223_v32, 0.0 }
  0xf5   :  { %228 = vst [vmem:[#allocation2 + $0x10] sm:$0xff] %v225_v33 }
  0xf6   :  { %273 = shalt.err (!%p270_p4)
}
  0xf7   :  { %s288_s16 = smov 128   ;;  %s289_s17 = smov 8  }
  0xf8   :  { %241 = dma.vmem_to_hbm [thread:$0]  %s236_s14, 512, %s326_s1, [#allocation3], %s288_s16, %s288_s16, %s289_s17  }
  0xf9   :  { %282 = dma.done.wait [#allocation3], 512  }
  0xfa   :  { %283 = vsyncadd [#allocation3], 4294966784 }
  0xfb   :  { %245 = vsyncpa [#allocation3], 1 }

</bundles_post_ra>
